<compile_context>
chip_gen: v6e
topology: v6e:2x2x1
jax: 0.10.0
libtpu: 0.0.40
codegen_flags: <defaults>
</compile_context>

<pallas_src>
import functools

import numpy as np
import jax
import jax.numpy as jnp
from jax.experimental import pallas as pl
from jax.experimental.pallas import tpu as pltpu


_LANE = 128             # lane axis of every block
_MAX_BLOCK_ROWS = 2048  # 2048*128*4 B = 1 MiB per block per buffer (v5e safe)
_PAD_VALUE = 1000.0     # benign positive temperature used for the tail pad


def _round_up(v, m):
    return ((v + m - 1) // m) * m


# ----------------------------------------------------------------------------
# Ei(x) for x <= 0  (Ei(x) = -E1(-x)); pure jnp.  Used for the scalar T_max
# precomputation in the wrapper and for the pure-JAX reference path.
# ----------------------------------------------------------------------------
def ei_negative(x):
    z = jnp.maximum(-x, 1e-30)  # z > 0
    # small-argument polynomial (A&S 5.1.53), 0 < z <= 1
    e1_small = (-jnp.log(z)
                + (-0.57721566
                   + z * (0.99999193
                          + z * (-0.24991055
                                 + z * (0.05519968
                                        + z * (-0.00976004
                                               + z * 0.00107857))))))
    # large-argument rational approximation (A&S 5.1.56), z > 1
    p = (((z + 8.5733287401) * z + 18.059016973) * z + 8.6347608925) * z + 0.2677737343
    q = (((z + 9.5733223454) * z + 25.6329561486) * z + 21.0996530827) * z + 3.9584969228
    e1_large = jnp.exp(-z) / z * (p / q)
    e1 = jnp.where(z <= 1.0, e1_small, e1_large)
    return -e1


# ----------------------------------------------------------------------------
# Pallas kernel: elementwise 'second' model body.
#   s_ref (SMEM, f32[6]) = [E, exp(K), E/T_max, U, C, integral(T_max)]
#     where C = (1/3) * exp(f(T_max)/2) and f(t) = K - E/t.
#   assume_large_z (static Python bool): if True, the caller guarantees
#     E/t > 1 for every element, so the small-argument E1 branch is not
#     compiled at all.
# ----------------------------------------------------------------------------
def oxide_kernel(s_ref, x_ref, o_ref, *, assume_large_z):
    E           = s_ref[0]
    exp_k       = s_ref[1]
    e_over_tmax = s_ref[2]
    u           = s_ref[3]
    c           = s_ref[4]
    int_tmax    = s_ref[5]

    t = jnp.maximum(x_ref[...], 1e-10)          # safe_input
    # E / t via EUP approx reciprocal + one Newton step (VALU is the binding
    # slot, EUP has slack; rel. error ~1e-7, far inside the output tolerance).
    inv_t = pl.reciprocal(t, approx=True)
    inv_t = inv_t * (2.0 - t * inv_t)
    e_over_t = E * inv_t                        # z = E/t
    exp_neg = jnp.exp(-e_over_t)                # shared by integral & E1
    t_exp_neg = t * exp_neg

    # A&S 5.1.56 rational approximation of E1(z), z > 1.  z is clamped only
    # for the Horner polynomials: for z > ~88 exp(-z) == 0 in f32 so the E1
    # contribution is exactly zero anyway; the clamp just prevents z**4
    # overflowing to inf (and 0*inf -> NaN) when t is near the 1e-10 floor.
    zr = jnp.minimum(e_over_t, 1.0e4)
    p = (((zr + 8.5733287401) * zr + 18.059016973) * zr + 8.6347608925) * zr + 0.2677737343
    q = (((zr + 9.5733223454) * zr + 25.6329561486) * zr + 21.0996530827) * zr + 3.9584969228
    inv_q = pl.reciprocal(q, approx=True)       # EUP slot
    inv_q = inv_q * (2.0 - q * inv_q)           # Newton step (load-bearing)
    pq = p * inv_q

    # E * E1_large(z) = E * exp(-z)/z * (p/q) = t * exp(-z) * (p/q)
    if assume_large_z:
        # integral(t) = exp(K)*(t*exp(-z) - E*E1(z)) = exp(K)*t*exp(-z)*(1 - p/q)
        integral_t = exp_k * (t_exp_neg * (1.0 - pq))
    else:
        zs = jnp.maximum(e_over_t, 1e-30)
        # A&S 5.1.53 for 0 < z <= 1
        e1_small = (-jnp.log(zs)
                    + (-0.57721566
                       + zs * (0.99999193
                               + zs * (-0.24991055
                                       + zs * (0.05519968
                                               + zs * (-0.00976004
                                                      + zs * 0.00107857))))))
        e_e1 = jnp.where(e_over_t <= 1.0, E * e1_small, t_exp_neg * pq)
        integral_t = exp_k * (t_exp_neg - e_e1)

    result = integral_t - int_tmax
    # exp_arg = f(t) - f(T_max) = E/T_max - E/t.  Bounded above by E/T_max by
    # construction and f32 exp underflows cleanly for large negative args, so
    # the torch-side clamp to [-100, 100] is a runtime no-op and is dropped.
    exp_arg = e_over_tmax - e_over_t
    # relu2(U - (1/3)*exp(f(T_max)/2) * result)
    r = jnp.maximum(u - c * result, 0.0)
    o_ref[...] = jnp.exp(exp_arg) * r * r


# ----------------------------------------------------------------------------
# Model wrapper: holds the (deterministically initialized) parameters, does the
# scalar precomputation in plain JAX, and launches the kernel.
# ----------------------------------------------------------------------------
class OxideModelPallas:
    def __init__(self, e_state, v_state, t_state, b_state, model="second"):
        assert model == "second"  # TODO(synk): 'first' model branch not implemented
        self.e_state, self.v_state = e_state, v_state
        self.t_state, self.b_state = t_state, b_state
        # deterministic parameter init, same formulas as the torch module
        self.E           = jnp.float32(np.log(e_state["init"] / e_state["scale"]))
        self.T_max_delta = jnp.float32(0.0)
        self.T_beg_delta = jnp.float32(0.0)
        self.V_max       = jnp.float32(np.log(v_state["init"] / v_state["scale"]))

    def _scalars(self, global_shift):
        E = jnp.clip(jnp.exp(self.E) * self.e_state["scale"], 1e-10, 1e10)
        V = jnp.clip(jnp.exp(self.V_max) * self.v_state["scale"], 1e-10, 1e10)
        t_max = (self.t_state["init"]
                 + self.t_state["delta"] * jnp.tanh(self.T_max_delta * self.t_state["delta_scale"])
                 + global_shift)
        safe_t_max = jnp.maximum(t_max, 1e-10)
        U = jnp.sqrt(V)
        # NOTE: exp(K) can overflow f32 if E/safe_t_max > ~85 (e.g. a huge
        # negative global_shift); matches torch semantics otherwise (f64 there).
        K = E / safe_t_max + (2.0 / 3.0) * jnp.log(1.5 * E * U / safe_t_max ** 2)
        exp_k = jnp.exp(K)
        neg = -E / safe_t_max
        int_tmax = exp_k * (safe_t_max * jnp.exp(neg) + E * ei_negative(neg))
        f_tmax = K - E / safe_t_max
        C = (1.0 / 3.0) * jnp.exp(f_tmax / 2.0)
        return jnp.stack([E, exp_k, E / safe_t_max, U, C, int_tmax]).astype(jnp.float32)

    def __call__(self, x, global_shift, z_regime="auto"):
        """z_regime: "auto" (always correct) or "large" (caller asserts that
        E/t > 1 for every element, i.e. all temperatures are below E)."""
        assert z_regime in ("auto", "large")
        orig_shape = x.shape
        n = int(x.size)
        xf = jnp.ravel(x).astype(jnp.float32)

        # Layout: (rows, 128), rows only 8-aligned (pad <= 1023 tail elements).
        rows = _round_up(max(pl.cdiv(max(n, 1), _LANE), 1), 8)
        n_pad = rows * _LANE
        if n_pad != n:
            xf = jnp.pad(xf, (0, n_pad - n), constant_values=_PAD_VALUE)
        x2 = xf.reshape(rows, _LANE)

        # Block rows: guarantee >= 2 grid steps when rows >= 16 (v7x megacore),
        # capped at 2048 rows (1 MiB/block; 4 MiB double-buffered in+out fits
        # every generation's default scoped VMEM, incl. v5e).  The boundary
        # block (when tr does not divide rows) is masked by Pallas.
        if rows >= 16:
            tr = min(_MAX_BLOCK_ROWS, _round_up(pl.cdiv(rows, 2), 8))
        else:
            tr = rows
        grid = (pl.cdiv(rows, tr),)

        scalars = self._scalars(jnp.float32(global_shift))

        n_elem = rows * _LANE
        cost = pl.CostEstimate(flops=40 * n_elem,
                               transcendentals=5 * n_elem,
                               bytes_accessed=8 * n_elem)

        kernel = functools.partial(oxide_kernel,
                                   assume_large_z=(z_regime == "large"))

        # TODO(synk): could pass input_output_aliases={1: 0} to reuse the padded
        # staging buffer for the output when the caller donates x (footprint only).
        out = pl.pallas_call(
            kernel,
            out_shape=jax.ShapeDtypeStruct((rows, _LANE), jnp.float32),
            grid=grid,
            in_specs=[
                pl.BlockSpec(memory_space=pltpu.MemorySpace.SMEM),   # scalars f32[6]
                pl.BlockSpec((tr, _LANE), lambda i: (i, 0)),         # input tile
            ],
            out_specs=pl.BlockSpec((tr, _LANE), lambda i: (i, 0)),
            compiler_params=pltpu.CompilerParams(
                dimension_semantics=("parallel",)),
            cost_estimate=cost,
        )(scalars, x2)

        return out.reshape(-1)[:n].reshape(orig_shape)

    # pure-JAX reference (same math, exact divides, no Pallas) for sanity checks
    def reference(self, x, global_shift):
        s = self._scalars(jnp.float32(global_shift))
        E, exp_k, e_over_tmax, U, C, int_tmax = [s[i] for i in range(6)]
        t = jnp.maximum(x.astype(jnp.float32), 1e-10)
        neg = -E / t
        integral_t = exp_k * (t * jnp.exp(neg) + E * ei_negative(neg))
        result = integral_t - int_tmax
        exp_arg = jnp.clip(e_over_tmax + neg, -100.0, 100.0)
        r = jnp.maximum(U - C * result, 0.0)
        return jnp.exp(exp_arg) * r * r


if __name__ == "__main__":
    e_state = {"init": 1.0e4, "scale": 1.0e4}
    v_state = {"init": 1.0, "scale": 1.0}
    t_state = {"init": 900.0, "delta": 50.0, "delta_scale": 1.0}
    b_state = {"init": 300.0, "delta": 50.0, "delta_scale": 1.0}

    model = OxideModelPallas(e_state, v_state, t_state, b_state, model="second")
    global_shift = 10.0

    key = jax.random.PRNGKey(0)
    k1, k2, k3, k4 = jax.random.split(key, 4)
    # 1) tile-aligned physical temperatures (all below E -> "large" fast path is valid)
    x1 = jax.random.uniform(k1, (16, 128), dtype=jnp.float32, minval=300.0, maxval=1200.0)
    # 2) odd shape (exercises flat tail pad + slice-back)
    x2 = jax.random.uniform(k2, (3, 5, 41), dtype=jnp.float32, minval=300.0, maxval=1200.0)
    # 3) temperatures above E (exercises the small-argument E1 where-branch)
    x3 = jax.random.uniform(k3, (8, 256), dtype=jnp.float32, minval=500.0, maxval=15000.0)
    # 4) rows not a multiple of the block rows (exercises the masked boundary block)
    x4 = jax.random.uniform(k4, (3, 1024), dtype=jnp.float32, minval=300.0, maxval=1200.0)

    cases = [
        (x1, "large"),   # physical regime asserted statically
        (x1, "auto"),
        (x2, "auto"),
        (x3, "auto"),
        (x4, "large"),
    ]
    for x, regime in cases:
        out = jax.block_until_ready(model(x, global_shift, z_regime=regime))
        ref = model.reference(x, global_shift)
        assert out.shape == x.shape and out.dtype == jnp.float32
        assert bool(jnp.all(jnp.isfinite(out)))
        # tolerance accounts for the Newton-refined approx reciprocals and f32
        # cancellation in (integral(t) - integral(T_max))
        np.testing.assert_allclose(np.asarray(out), np.asarray(ref),
                                   rtol=1e-3, atol=1e-4)
    print("KERNEL_OK")
</pallas_src>

<mosaic_0001>
module attributes {stable_mosaic.version = 11 : i64} {
  func.func @oxide_kernel(%arg0: i32, %arg1: memref<6xf32, #tpu.memory_space<smem>>, %arg2: memref<8x128xf32, #tpu.memory_space<vmem>>, %arg3: memref<8x128xf32, #tpu.memory_space<vmem>>) attributes {dimension_semantics = [#tpu.dimension_semantics<parallel>], iteration_bounds = array<i64: 2>, scalar_prefetch = 0 : i64, scratch_operands = 0 : i64, tpu.core_type = #tpu.core_type<tc>, window_params = [{transform_indices = @transform_0, window_bounds = array<i64: 6>}, {transform_indices = @transform_1, window_bounds = array<i64: 8, 128>}, {transform_indices = @transform_2, window_bounds = array<i64: 8, 128>}]} {
    %c0 = arith.constant 0 : index
    %0 = memref.load %arg1[%c0] : memref<6xf32, #tpu.memory_space<smem>>
    %c1 = arith.constant 1 : index
    %1 = memref.load %arg1[%c1] : memref<6xf32, #tpu.memory_space<smem>>
    %c2 = arith.constant 2 : index
    %2 = memref.load %arg1[%c2] : memref<6xf32, #tpu.memory_space<smem>>
    %c3 = arith.constant 3 : index
    %3 = memref.load %arg1[%c3] : memref<6xf32, #tpu.memory_space<smem>>
    %c4 = arith.constant 4 : index
    %4 = memref.load %arg1[%c4] : memref<6xf32, #tpu.memory_space<smem>>
    %c5 = arith.constant 5 : index
    %5 = memref.load %arg1[%c5] : memref<6xf32, #tpu.memory_space<smem>>
    %c0_0 = arith.constant 0 : index
    %c0_1 = arith.constant 0 : index
    %6 = vector.load %arg2[%c0_0, %c0_1] : memref<8x128xf32, #tpu.memory_space<vmem>>, vector<8x128xf32>
    %cst = arith.constant 1.000000e-10 : f32
    %7 = vector.broadcast %cst : f32 to vector<8x128xf32>
    %8 = arith.maximumf %6, %7 : vector<8x128xf32>
    %9 = tpu.reciprocal %8 {approx = true} : vector<8x128xf32> -> vector<8x128xf32>
    %10 = arith.mulf %8, %9 : vector<8x128xf32>
    %cst_2 = arith.constant 2.000000e+00 : f32
    %11 = vector.broadcast %cst_2 : f32 to vector<8x128xf32>
    %12 = arith.subf %11, %10 : vector<8x128xf32>
    %13 = arith.mulf %9, %12 : vector<8x128xf32>
    %14 = vector.broadcast %0 : f32 to vector<8x128xf32>
    %15 = arith.mulf %14, %13 : vector<8x128xf32>
    %cst_3 = arith.constant 0.000000e+00 : f32
    %16 = vector.broadcast %cst_3 : f32 to vector<8x128xf32>
    %17 = arith.subf %16, %15 : vector<8x128xf32>
    %18 = math.exp %17 : vector<8x128xf32>
    %19 = arith.mulf %8, %18 : vector<8x128xf32>
    %cst_4 = arith.constant 1.000000e+04 : f32
    %20 = vector.broadcast %cst_4 : f32 to vector<8x128xf32>
    %21 = arith.minimumf %15, %20 : vector<8x128xf32>
    %cst_5 = arith.constant 8.57332897 : f32
    %22 = vector.broadcast %cst_5 : f32 to vector<8x128xf32>
    %23 = arith.addf %21, %22 : vector<8x128xf32>
    %24 = arith.mulf %23, %21 : vector<8x128xf32>
    %cst_6 = arith.constant 18.0590172 : f32
    %25 = vector.broadcast %cst_6 : f32 to vector<8x128xf32>
    %26 = arith.addf %24, %25 : vector<8x128xf32>
    %27 = arith.mulf %26, %21 : vector<8x128xf32>
    %cst_7 = arith.constant 8.63476085 : f32
    %28 = vector.broadcast %cst_7 : f32 to vector<8x128xf32>
    %29 = arith.addf %27, %28 : vector<8x128xf32>
    %30 = arith.mulf %29, %21 : vector<8x128xf32>
    %cst_8 = arith.constant 0.267773747 : f32
    %31 = vector.broadcast %cst_8 : f32 to vector<8x128xf32>
    %32 = arith.addf %30, %31 : vector<8x128xf32>
    %cst_9 = arith.constant 9.57332229 : f32
    %33 = vector.broadcast %cst_9 : f32 to vector<8x128xf32>
    %34 = arith.addf %21, %33 : vector<8x128xf32>
    %35 = arith.mulf %34, %21 : vector<8x128xf32>
    %cst_10 = arith.constant 25.6329556 : f32
    %36 = vector.broadcast %cst_10 : f32 to vector<8x128xf32>
    %37 = arith.addf %35, %36 : vector<8x128xf32>
    %38 = arith.mulf %37, %21 : vector<8x128xf32>
    %cst_11 = arith.constant 21.0996532 : f32
    %39 = vector.broadcast %cst_11 : f32 to vector<8x128xf32>
    %40 = arith.addf %38, %39 : vector<8x128xf32>
    %41 = arith.mulf %40, %21 : vector<8x128xf32>
    %cst_12 = arith.constant 3.95849681 : f32
    %42 = vector.broadcast %cst_12 : f32 to vector<8x128xf32>
    %43 = arith.addf %41, %42 : vector<8x128xf32>
    %44 = tpu.reciprocal %43 {approx = true} : vector<8x128xf32> -> vector<8x128xf32>
    %45 = arith.mulf %43, %44 : vector<8x128xf32>
    %cst_13 = arith.constant 2.000000e+00 : f32
    %46 = vector.broadcast %cst_13 : f32 to vector<8x128xf32>
    %47 = arith.subf %46, %45 : vector<8x128xf32>
    %48 = arith.mulf %44, %47 : vector<8x128xf32>
    %49 = arith.mulf %32, %48 : vector<8x128xf32>
    %cst_14 = arith.constant 1.000000e+00 : f32
    %50 = vector.broadcast %cst_14 : f32 to vector<8x128xf32>
    %51 = arith.subf %50, %49 : vector<8x128xf32>
    %52 = arith.mulf %19, %51 : vector<8x128xf32>
    %53 = vector.broadcast %1 : f32 to vector<8x128xf32>
    %54 = arith.mulf %53, %52 : vector<8x128xf32>
    %55 = vector.broadcast %5 : f32 to vector<8x128xf32>
    %56 = arith.subf %54, %55 : vector<8x128xf32>
    %57 = vector.broadcast %2 : f32 to vector<8x128xf32>
    %58 = arith.subf %57, %15 : vector<8x128xf32>
    %59 = vector.broadcast %4 : f32 to vector<8x128xf32>
    %60 = arith.mulf %59, %56 : vector<8x128xf32>
    %61 = vector.broadcast %3 : f32 to vector<8x128xf32>
    %62 = arith.subf %61, %60 : vector<8x128xf32>
    %cst_15 = arith.constant 0.000000e+00 : f32
    %63 = vector.broadcast %cst_15 : f32 to vector<8x128xf32>
    %64 = arith.maximumf %62, %63 : vector<8x128xf32>
    %65 = math.exp %58 : vector<8x128xf32>
    %66 = arith.mulf %65, %64 : vector<8x128xf32>
    %67 = arith.mulf %66, %64 : vector<8x128xf32>
    %c0_16 = arith.constant 0 : index
    %c0_17 = arith.constant 0 : index
    %68 = vector.load %arg3[%c0_16, %c0_17] : memref<8x128xf32, #tpu.memory_space<vmem>>, vector<8x128xf32>
    tpu.vector_store %arg3[%c0_16, %c0_17], %67 {strides = array<i32>} : memref<8x128xf32, #tpu.memory_space<vmem>>, vector<8x128xf32>,
    return
  }
  func.func @transform_0(%arg0: i32) -> i32 {
    %c0_i32 = arith.constant 0 : i32
    %c0_i32_0 = arith.constant 0 : i32
    return %c0_i32 : i32
  }
  func.func @transform_1(%arg0: i32) -> (i32, i32) {
    %c0_i32 = arith.constant 0 : i32
    %c0_i32_0 = arith.constant 0 : i32
    return %arg0, %c0_i32 : i32, i32
  }
  func.func @transform_2(%arg0: i32) -> (i32, i32) {
    %c0_i32 = arith.constant 0 : i32
    %c0_i32_0 = arith.constant 0 : i32
    return %arg0, %c0_i32 : i32, i32
  }
}

</mosaic_0001>

<bundles_post_ra>
// kernel: tpu_custom_call.1
= control target key start
LH: loop header
LB: loop body
LE: loop exit
PB: predicated region body
PF: predicated region fallthrough
CT: control target
= control target key end

     0   :  { %7 = vsyncpa [#allocation5], 0  ;;  %s690_s0 = inlined_call_operand.hbm [shape: f32[6], index: 0, kind: input, shape index: {}]   ;;  %s691_s1 = inlined_call_operand.hbm [shape: f32[16,128], index: 1, kind: input, shape index: {}]   ;;  %s692_s2 = inlined_call_operand.hbm [shape: f32[16,128], index: 2, kind: output, shape index: {}]  }
   0x1   :  { %8 = vsyncpa [#allocation3], 0 }
   0x2   :  { %10 = vsyncpa [#allocation3 + $0x1], 0 }
   0x3   :  { %11 = vsyncpa [#allocation4], 0 }
   0x4   :  { %13 = vsyncpa [#allocation4 + $0x1], 0  ;;  %s534_s9 = smov 0   ;;  %s536_s10 = smov 0  }
   0x5   :  { %s538_s11 = smov 0   ;;  %s540_s12 = smov 0  }
   0x6 LB: > { %s555_s13 = sadd.s32 4294967295, %s514_s12   ;;  %s323_s14 = sadd.s32 4294967294, %s514_s12   ;;  %s514_s12 = sphi %s540_s12, %s712_s12   ;;  %s510_s11 = sphi %s538_s11, %s711_s11   ;;  %s506_s10 = sphi %s536_s10, %s710_s10   ;;  %s502_s9 = sphi %s534_s9, %s709_s9  }
   0x7   : > { %p60_p0 = scmp.ne.s32.totalorder %s506_s10, %s502_s9  ;;  %p693_p1 = scmp.eq.s32.totalorder %s555_s13, 0 }
   0x8   : > { %p84_p2 = scmp.eq.s32.totalorder %s555_s13, 1  ;;  %p90_p3 = scmp.eq.s32.totalorder %s323_s14, 1 }
   0x9   : > { %p564_p4 = por %p693_p1, %p60_p0  ;;  %p324_p5 = scmp.ge.s32.totalorder %s514_s12, 1 }
   0xa   : > { %p569_p6 = por %p90_p3, %p60_p0  ;;  %p97_p7 = scmp.lt.s32.totalorder %s514_s12, 3 }
   0xb   : > { %s697_s15 = scalar_select %p564_p4, 1, 0 }
   0xc   : > { %s698_s16 = scalar_select %p569_p6, 1, 0 }
   0xd   : > { %p574_p8 = pnand %p324_p5, %p97_p7  ;;  %s580_s18 = sadd.s32 1, %s514_s12  }
   0xe   : > { %s44_s19 = ssub.s32 %s514_s12, %s580_s18  ;;  %s47_s20 = sadd.s32 1, %s510_s11 }
   0xf   : > { %s699_s17 = scalar_select %p574_p8, 1, 0 }
  0x10   : > { %p350_p10 = pneg %p574_p8  ;;  %p45_p12 = scmp.eq.s32.totalorder %s44_s19, 0 }
  0x11   : > { %p54_p13 = scmp.ne.s32.totalorder %s510_s11, %s506_s10  ;;  %p55_p0 = scmp.eq.s32.totalorder %s514_s12, 0 }
  0x12   : > { %p351_p11 = pnand %p350_p10, %p693_p1  ;;  %p363_p3 = scmp.lt.s32.totalorder %s514_s12, 2 }
  0x13   : > { %s516_s21 = smov [#allocation2]   ;;  %p56_p5 = por %p55_p0, %p54_p13 }
  0x14   : > { %353 = dma.hbm_to_smem (!%p351_p11), %s690_s0, 16, %s516_s21, [#allocation5]  }
  0x15   : > { %s597_s24 = scalar_select %p45_p12, %s510_s11, %s47_s20  }
  0x16   : > { %p601_p7 = por %p84_p2, %p54_p13  ;;  %s119_s26 = sand.u32 1, %s510_s11  }
  0x17   : > { %s328_s27 = sshll.u32 %s514_s12, 7  ;;  %s327_s28 = sshll.u32 %s119_s26, 3 }
  0x18   : > { %s700_s25 = scalar_select %p601_p7, 1, 0 }
  0x19   : > { %s610_s3 = scalar_lea.hbm %s691_s1, %s328_s27  ;;  %s123_s4 = scalar_lea.vmem [#allocation6], %s327_s28 }
  0x1a   : > { %s130_s5 = sshll.u32 %s123_s4, 4  ;;  %p612_p10 = pnand %p363_p3, %p56_p5  ;;  %s131_s5 = int_to_ptr.vmem [resolvable:$true] %s130_s5 }
  0x1b   : > { %s120_s7 = scalar_lea.sflag [#allocation3], %s119_s26  ;;  %s418_s8 = scalar_lea.hbm %s610_s3, 128 }
  0x1c   : > { %p419_p2 = scmp.ne.s32.totalorder %s610_s3, %s418_s8  ;;  %p420_p11 = pneg %p612_p10 }
  0x1d   : > { %s423_s20 = scalar_lea.hbm %s691_s1, 256  ;;  %p424_p0 = scmp.lt.s32.totalorder %s610_s3, %s691_s1 }
  0x1e   : > { %p421_p12 = pnand %p420_p11, %p419_p2  ;;  %p425_p3 = scmp.lt.s32.totalorder %s423_s20, %s418_s8 }
  0x20   : > { %p422_p13 = pneg %p421_p12  ;;  %p426_p5 = por %p425_p3, %p424_p0 }
  0x22   : > { %p427_p9 = pnand %p426_p5, %p422_p13 }
  0x24   : > { %430 = shalt.err (!%p427_p9)
}
  0x25   : > { %s431_s23 = scalar_lea.vmem %s131_s5, 128  ;;  %s517_s26 = smov [#allocation6]  }
  0x26   : > { %p432_p1 = scmp.ne.s32.totalorder %s131_s5, %s431_s23  ;;  %s436_s27 = sshll.u32 %s517_s26, 4  ;;  %s437_s27 = int_to_ptr.vmem [resolvable:$false] %s436_s27 }
  0x27   : > { %s438_s28 = scalar_lea.vmem %s437_s27, 256  ;;  %p439_p2 = scmp.lt.s32.totalorder %s131_s5, %s437_s27 }
  0x28   : > { %p434_p6 = pnand %p432_p1, %p420_p11  ;;  %p440_p12 = scmp.lt.s32.totalorder %s438_s28, %s431_s23 }
  0x2a   : > { %p435_p7 = pneg %p434_p6  ;;  %p441_p4 = por %p440_p12, %p439_p2 }
  0x2c   : > { %p442_p8 = pnand %p441_p4, %p435_p7 }
  0x2e   : > { %445 = shalt.err (!%p442_p8)
}
  0x2f   : > { %357 = dma.hbm_to_vmem [thread:$0]  (!%p612_p10), %s610_s3, 128, %s131_s5, %s120_s7  }
  0x30   : > { %p702_p13 = scmp.ne.s32.totalorder %s699_s17, 0 }
  0x31   : > { %p703_p9 = scmp.eq.s32.totalorder (!%p702_p13), %s555_s13, 0 }
  0x32   : > { %139 = sbr.rel (%p702_p13) target bundleno = 156 (0x9c), region = 28 }
  0x37   : > { %489 = dma.done.wait (%p703_p9), [#allocation5], 16   ;;  %p704_p1 = pmov %p703_p9 }
  0x38   : > { %s637_s29 = sand.u32 1, %s506_s10   ;;  %p705_p4 = scmp.ne.s32.totalorder %s697_s15, 0 }
  0x39   : > { %491 = vsyncadd (%p704_p1), [#allocation5], 4294967280  ;;  %s331_s30 = sshll.u32 %s637_s29, 3  ;;  %s146_s4 = scalar_lea.sflag [#allocation3], %s637_s29 }
  0x3a   : > { %s149_s3 = scalar_lea.vmem [#allocation6], %s331_s30 }
  0x3b   : > { %493 = dma.done.wait (%p705_p4), %s146_s4, 128  }
  0x3c   : > { %495 = vsyncadd (%p705_p4), %s146_s4, 4294967168 }
  0x3d   : > { %154 = sfence }
  0x3e   : > { %v177_v0 = vld [vmem:[%s149_s3] sm:$0xff]  ;;  %s171_s17 = sld [smem:[#allocation2]]  ;;  %s170_s14 = scalar_lea.vmem [#allocation7], %s331_s30 }
  0x3f   : > { %v178_v1 = vmax.f32 %v177_v0, 1e-10  ;;  %s334_s15 = sld [smem:[#allocation2 + $0x2]]  ;;  %s241_s19 = sshll.u32 %s170_s14, 4  ;;  %s650_s19 = int_to_ptr.vmem [resolvable:$true] %s241_s19 }
  0x40   : > { %s333_s5 = sld [smem:[#allocation2 + $0x1]]  ;;  %s339_s20 = sshll.u32 %s555_s13, 7 }
  0x41   : > { %399 = vrcp.f32 %v178_v1  ;;  %s337_s6 = sld [smem:[#allocation2 + $0x5]]  ;;  %s239_s23 = scalar_lea.hbm %s692_s2, %s339_s20 }
  0x42   : > { %s336_s7 = sld [smem:[#allocation2 + $0x4]]  ;;  %s228_s26 = scalar_lea.sflag [#allocation4], %s637_s29 }
  0x43   : > { %s335_s8 = sld [smem:[#allocation2 + $0x3]]  ;;  %s446_s27 = scalar_lea.vmem %s650_s19, 128 }
  0x44   : > { %v183_v5 = vstv %s171_s17  ;;  %p447_p6 = scmp.ne.s32.totalorder %s650_s19, %s446_s27  ;;  %p706_p8 = scmp.ne.s32.totalorder %s700_s25, 0 }
  0x45   : > { %v215_v23 = vstv %s334_s15  ;;  %s518_s28 = smov [#allocation7]  }
  0x46   : > { %v211_v36 = vstv %s333_s5  ;;  %p448_p7 = pnand %p447_p6, %p706_p8  ;;  %s450_s13 = sshll.u32 %s518_s28, 4  ;;  %s451_s13 = int_to_ptr.vmem [resolvable:$false] %s450_s13 }
  0x47   : > { %v213_v38 = vstv %s337_s6  ;;  %s452_s30 = scalar_lea.vmem %s451_s13, 256  ;;  %p453_p11 = scmp.lt.s32.totalorder %s650_s19, %s451_s13 }
  0x48   : > { %v217_v40 = vstv %s336_s7  ;;  %p449_p10 = pneg %p448_p7  ;;  %p454_p0 = scmp.lt.s32.totalorder %s452_s30, %s446_s27 }
  0x49   : > { %v219_v42 = vstv %s335_s8 }
  0x4a   : > { %p455_p3 = por %p454_p0, %p453_p11 }
  0x4c   : > { %p456_p5 = pnand %p455_p3, %p449_p10 }
  0x4e   : > { %v400_v2 = vpop.eup %399 }
  0x4f   : > { %v180_v3 = vmul.f32 %v400_v2, %v178_v1 }
  0x51   : > { %v181_v4 = vsub.f32 2.0, %v180_v3 }
  0x53   : > { %v182_v6 = vmul.f32 %v400_v2, %v181_v4 }
  0x55   : > { %v184_v7 = vmul.f32 %v183_v5, %v182_v6 }
  0x57   : > { %v189_v8 = vmin.f32 %v184_v7, 10000.0  ;;  %v185_v15 = vsub.f32 0.0, %v184_v7  ;;  %v216_v25 = vsub.f32 %v215_v23, %v184_v7 }
  0x59   : > { %v197_v9 = vadd.f32 9.573322, %v189_v8  ;;  %v190_v12 = vadd.f32 8.573329, %v189_v8  ;;  %v186_v19 = vmul.f32 1.442695, %v185_v15 }
  0x5a   : > { %v222_v30 = vmul.f32 1.442695, %v216_v25 }
  0x5b   : > { %v198_v10 = vmul.f32 %v197_v9, %v189_v8  ;;  %v191_v16 = vmul.f32 %v190_v12, %v189_v8 }
  0x5d   : > { %v199_v11 = vadd.f32 25.632956, %v198_v10  ;;  %v192_v20 = vadd.f32 18.059017, %v191_v16 }
  0x5f   : > { %v200_v13 = vmul.f32 %v199_v11, %v189_v8  ;;  %v193_v21 = vmul.f32 %v192_v20, %v189_v8 }
  0x61   : > { %v201_v14 = vadd.f32 21.099653, %v200_v13  ;;  %v194_v22 = vadd.f32 8.634761, %v193_v21 }
  0x63   : > { %v202_v17 = vmul.f32 %v201_v14, %v189_v8  ;;  %v195_v24 = vmul.f32 %v194_v22, %v189_v8 }
  0x65   : > { %v203_v18 = vadd.f32 3.9584968, %v202_v17  ;;  %v196_v28 = vadd.f32 0.26777375, %v195_v24 }
  0x67   : > { %401 = vrcp.f32 %v203_v18 }
  0x68   : > { %403 = vpow2.f32 %v186_v19 }
  0x69   : > { %405 = vpow2.f32 %v222_v30 }
  0x74   : > { %v402_v26 = vpop.eup %401 }
  0x75   : > { %v205_v27 = vmul.f32 %v402_v26, %v203_v18  ;;  %v404_v31 = vpop.eup %403 }
  0x76   : > { %v188_v33 = vmul.f32 %v404_v31, %v178_v1  ;;  %v406_v45 = vpop.eup %405 }
  0x77   : > { %v206_v29 = vsub.f32 2.0, %v205_v27 }
  0x79   : > { %v207_v32 = vmul.f32 %v402_v26, %v206_v29 }
  0x7b   : > { %v208_v34 = vmul.f32 %v207_v32, %v196_v28 }
  0x7d   : > { %v209_v35 = vsub.f32 1.0, %v208_v34 }
  0x7f   : > { %v210_v37 = vmul.f32 %v209_v35, %v188_v33 }
  0x81   : > { %v212_v39 = vmul.f32 %v211_v36, %v210_v37 }
  0x83   : > { %v214_v41 = vsub.f32 %v212_v39, %v213_v38 }
  0x85   : > { %v218_v43 = vmul.f32 %v217_v40, %v214_v41 }
  0x87   : > { %v220_v44 = vsub.f32 %v219_v42, %v218_v43 }
  0x89   : > { %v221_v46 = vmax.f32 %v220_v44, 0.0 }
  0x8b   : > { %v224_v47 = vmul.f32 %v406_v45, %v221_v46 }
  0x8d   : > { %v225_v48 = vmul.f32 %v224_v47, %v221_v46 }
  0x8f   : > { %226 = vst [vmem:[%s170_s14] sm:$0xff] %v225_v48 }
  0x90   : > { %459 = shalt.err (!%p456_p5)
}
  0x91   : > { %s460_s4 = scalar_lea.hbm %s239_s23, 128  ;;  %s464_s17 = scalar_lea.hbm %s692_s2, 256 }
  0x92   : > { %p461_p2 = scmp.ne.s32.totalorder %s239_s23, %s460_s4  ;;  %p465_p9 = scmp.lt.s32.totalorder %s239_s23, %s692_s2 }
  0x93   : > { %p466_p1 = scmp.lt.s32.totalorder %s464_s17, %s460_s4 }
  0x94   : > { %p462_p12 = pnand %p461_p2, %p706_p8 }
  0x95   : > { %p467_p4 = por %p466_p1, %p465_p9 }
  0x96   : > { %p463_p13 = pneg %p462_p12 }
  0x98   : > { %p468_p6 = pnand %p467_p4, %p463_p13 }
  0x9a   : > { %471 = shalt.err (!%p468_p6)
}
  0x9b   : > { %348 = dma.vmem_to_hbm [thread:$0]  (%p706_p8), %s650_s19, 128, %s239_s23, %s228_s26  }
  0x9c PF: > { %s253_s6 = sand.u32 1, %s502_s9   ;;  %p707_p7 = scmp.ne.s32.totalorder %s698_s16, 0 }
  0x9d   : > { %p708_p10 = scmp.ge.s32.totalorder %s514_s12, 2  ;;  %s254_s7 = scalar_lea.sflag [#allocation4], %s253_s6 }
  0x9f   : > { %p359_p11 = pnand %p708_p10, %p707_p7 }
  0xa1   : > { %p360_p0 = pneg %p359_p11 }
  0xa3   : > { %497 = dma.done.wait (%p360_p0), %s254_s7, 128  }
  0xa4   : > { %499 = vsyncadd (%p360_p0), %s254_s7, 4294967168  ;;  %p16_p3 = scmp.ge.s32.totalorder %s580_s18, 4   ;;  %s709_s9 = smov %s506_s10 }
  0xa5   : > { %s710_s10 = smov %s510_s11  ;;  %s711_s11 = smov %s597_s24 }
  0xa6   : > { %s712_s12 = smov %s580_s18  ;;  %18 = sbr.rel (!%p16_p3) target bundleno = 6 (0x6), region = 78 }
  0xab   :  { %259 = vsyncpa [#allocation3], 1 }
  0xac   :  { %261 = vsyncpa [#allocation3 + $0x1], 1 }
  0xad   :  { %262 = vsyncpa [#allocation4], 1 }
  0xae   :  { %264 = vsyncpa [#allocation4 + $0x1], 1 }
  0xaf   :  { %265 = vsyncpa [#allocation5], 1 }
  0xb0   :  { %267 = vsyncpa [#allocation5 + $0x1], 1 }

</bundles_post_ra>
